<compile_context>
chip_gen: v6e
topology: v6e:2x2x1
jax: 0.10.0
libtpu: 0.0.40
codegen_flags: <defaults>
</compile_context>

<pallas_src>
import jax
import jax.numpy as jnp
from jax.experimental import pallas as pl
from jax.experimental.pallas import tpu as pltpu


def _round_up(x, m):
    return ((x + m - 1) // m) * m


def _leaky_relu(x, slope=0.1):
    # valid for 0 <= slope <= 1; two VPU ops (mul + max), all in f32.
    return jnp.maximum(x, slope * x)


def qnet_kernel(x_ref, w1_ref, b1_ref, w2_ref, b2_ref, wa_ref, ba_ref,
                wv_ref, bv_ref, q_ref):
    # x tile arrives f32; cast after load so the wrapper never rewrites x.
    x = x_ref[...].astype(jnp.bfloat16)                               # (TB, n)

    h1 = jnp.dot(x, w1_ref[...], preferred_element_type=jnp.float32)
    h1 = _leaky_relu(h1 + b1_ref[...]).astype(jnp.bfloat16)          # (TB, H)

    h2 = jnp.dot(h1, w2_ref[...], preferred_element_type=jnp.float32)
    h2 = _leaky_relu(h2 + b2_ref[...]).astype(jnp.bfloat16)          # (TB, H)

    # Advantage head. Padding lanes (>= ncells) carry a -1e30 bias so they
    # never win the row max; the wrapper crops them away.
    a = jnp.dot(h2, wa_ref[...], preferred_element_type=jnp.float32)
    a = a + ba_ref[...]                                               # (TB, P)
    a_max = jnp.max(a, axis=-1, keepdims=True)                        # (TB, 1)

    # Value head: Wv zero-padded to 128 lanes; only lane 0 is non-zero, so a
    # plain lane-sum recovers v. This never touches HBM.
    v_full = jnp.dot(h2, wv_ref[...], preferred_element_type=jnp.float32)
    v = jnp.sum(v_full, axis=-1, keepdims=True) + bv_ref[0, 0]        # (TB, 1)

    q_ref[...] = (a - a_max + v).astype(q_ref.dtype)


def qnet_forward(x, prep, ncells, *, block_b=256):
    """x: (B, ncells) float32; prep: prepared (padded / bf16) params.

    Returns q: (B, ncells) bfloat16.
    """
    B, n = x.shape
    assert n == ncells
    H = prep["w1"].shape[1]          # lane-padded hidden width
    P = prep["w_a"].shape[1]         # lane-padded advantage width

    # Batch tile: multiple of 8 sublanes, capped at 256 rows (vreg pressure).
    TB = _round_up(min(block_b, 256, _round_up(B, 8)), 8)
    # Prefer >= 2 grid steps so v7x's two TensorCores both get work.
    if B > 8 and _round_up(B, TB) // TB < 2:
        TB = _round_up((B + 1) // 2, 8)
    Bp = _round_up(B, TB)

    xi = x if Bp == B else jnp.pad(x, ((0, Bp - B), (0, 0)))

    # Explicit scoped-VMEM budget (v5e defaults to only 16 MiB), with headroom,
    # capped at 64 MiB so the same number is valid on v7x.
    weight_bytes = 2 * (n * H + H * H + H * P + H * 128)          # bf16 weights
    bias_bytes = 4 * (2 * H + P)
    io_bytes = TB * n * 4 + TB * P * 2                            # x f32 in, q bf16 out
    est = 2 * (weight_bytes + bias_bytes + io_bytes)              # 2x buffering
    vmem_limit = int(min(64 << 20, max(2 * est + (4 << 20), 16 << 20)))

    out = pl.pallas_call(
        qnet_kernel,
        out_shape=jax.ShapeDtypeStruct((Bp, P), jnp.bfloat16),
        grid_spec=pltpu.PrefetchScalarGridSpec(
            num_scalar_prefetch=0,
            grid=(Bp // TB,),
            in_specs=[
                pl.BlockSpec((TB, n), lambda i: (i, 0)),     # x tile (pipelined)
                pl.BlockSpec((n, H), lambda i: (0, 0)),      # W1  (VMEM-resident)
                pl.BlockSpec((1, H), lambda i: (0, 0)),      # b1
                pl.BlockSpec((H, H), lambda i: (0, 0)),      # W2
                pl.BlockSpec((1, H), lambda i: (0, 0)),      # b2
                pl.BlockSpec((H, P), lambda i: (0, 0)),      # Wa (lane-padded)
                pl.BlockSpec((1, P), lambda i: (0, 0)),      # ba (-1e30 pad lanes)
                pl.BlockSpec((H, 128), lambda i: (0, 0)),    # Wv (zero-padded)
                pl.BlockSpec(memory_space=pltpu.MemorySpace.SMEM),  # bv scalar
            ],
            out_specs=pl.BlockSpec((TB, P), lambda i: (i, 0)),
        ),
        compiler_params=pltpu.CompilerParams(
            dimension_semantics=("parallel",),
            vmem_limit_bytes=vmem_limit),
    )(xi, prep["w1"], prep["b1"], prep["w2"], prep["b2"],
      prep["w_a"], prep["b_a"], prep["w_v"], prep["b_v"])

    # Consumers that accept the lane-padded bf16 slab (rows >= B and lanes >=
    # ncells are invalid) can skip this crop and save one extra XLA pass.
    return out[:B, :n]


def _orthogonal(key, shape, gain):
    """Deterministic orthogonal init (QR-based), mimicking nn.init.orthogonal_."""
    rows, cols = shape
    n = max(rows, cols)
    a = jax.random.normal(key, (n, n), dtype=jnp.float32)
    q, r = jnp.linalg.qr(a)
    q = q * jnp.sign(jnp.diag(r))
    return gain * q[:rows, :cols]


def make_params(key, ncells):
    gain = jnp.sqrt(2.0)
    k1, k2, k3, k4 = jax.random.split(key, 4)
    h = 2 * ncells
    # stored as (in, out); biases as (1, out) — matches x @ W + b
    return {
        "w1": _orthogonal(k1, (ncells, h), gain),
        "b1": jnp.zeros((1, h), jnp.float32),
        "w2": _orthogonal(k2, (h, h), gain),
        "b2": jnp.zeros((1, h), jnp.float32),
        "wa": _orthogonal(k3, (h, ncells), gain),
        "ba": jnp.zeros((1, ncells), jnp.float32),
        "wv": _orthogonal(k4, (h, 1), gain),
        "bv": jnp.zeros((1, 1), jnp.float32),
    }


def prepare_params(params, ncells):
    """Zero-pad to lane-dense shapes and cast weights to bf16.

    Hidden width is padded to a multiple of 128 with zero rows/cols (the padded
    activations stay exactly zero through LeakyReLU, so the forward output is
    unchanged). The advantage bias gets -1e30 on padding lanes so they never
    win the row max. The value head is a zero-padded (H, 128) block (only lane
    0 is non-zero) plus a (1,1) scalar bias consumed from SMEM.
    """
    n = ncells
    h = 2 * n
    H = _round_up(h, 128)
    P = _round_up(n, 128)
    w1 = jnp.zeros((n, H), jnp.float32).at[:, :h].set(params["w1"])
    b1 = jnp.zeros((1, H), jnp.float32).at[:, :h].set(params["b1"])
    w2 = jnp.zeros((H, H), jnp.float32).at[:h, :h].set(params["w2"])
    b2 = jnp.zeros((1, H), jnp.float32).at[:, :h].set(params["b2"])
    w_a = jnp.zeros((H, P), jnp.float32).at[:h, :n].set(params["wa"])
    b_a = jnp.full((1, P), -1e30, jnp.float32).at[:, :n].set(params["ba"])
    w_v = jnp.zeros((H, 128), jnp.float32).at[:h, :1].set(params["wv"])
    return {
        "w1": w1.astype(jnp.bfloat16), "b1": b1,
        "w2": w2.astype(jnp.bfloat16), "b2": b2,
        "w_a": w_a.astype(jnp.bfloat16), "b_a": b_a,
        "w_v": w_v.astype(jnp.bfloat16),
        "b_v": params["bv"].reshape(1, 1).astype(jnp.float32),
    }


def qnet_reference(x, params):
    """Pure-JAX reference mirroring the kernel numerics (bf16 weights, f32 acc,
    bf16 output), using the ORIGINAL (unpadded) parameters."""
    w1 = params["w1"].astype(jnp.bfloat16)
    w2 = params["w2"].astype(jnp.bfloat16)
    wa = params["wa"].astype(jnp.bfloat16)
    wv = params["wv"].astype(jnp.bfloat16)
    xb = x.astype(jnp.bfloat16)
    h1 = _leaky_relu(jnp.dot(xb, w1, preferred_element_type=jnp.float32)
                     + params["b1"]).astype(jnp.bfloat16)
    h2 = _leaky_relu(jnp.dot(h1, w2, preferred_element_type=jnp.float32)
                     + params["b2"]).astype(jnp.bfloat16)
    a = jnp.dot(h2, wa, preferred_element_type=jnp.float32) + params["ba"]
    v = jnp.dot(h2, wv, preferred_element_type=jnp.float32) + params["bv"]
    q = a - jnp.max(a, axis=-1, keepdims=True) + v
    return q.astype(jnp.bfloat16)


if __name__ == "__main__":
    # TODO(synk): sample_action (host-side epsilon-greedy with Python RNG) is
    # not a kernel; only forward() is implemented here.
    ncells = 16
    batch = 64          # small demo batch; block_b=16 exercises a 4-step grid

    key = jax.random.PRNGKey(0)
    kx, kp = jax.random.split(key)
    x = jax.random.normal(kx, (batch, ncells), dtype=jnp.float32)
    params = make_params(kp, ncells)
    prep = prepare_params(params, ncells)

    q = qnet_forward(x, prep, ncells, block_b=16)
    jax.block_until_ready(q)

    q_ref = qnet_reference(x, params)
    assert q.shape == (batch, ncells)
    assert q.dtype == jnp.bfloat16
    err = float(jnp.max(jnp.abs(q.astype(jnp.float32) - q_ref.astype(jnp.float32))))
    assert err < 1e-1, err

    print("KERNEL_OK")
</pallas_src>

<mosaic_0001>
module attributes {stable_mosaic.version = 11 : i64} {
  func.func @qnet_kernel(%arg0: i32, %arg1: memref<16x16xf32, #tpu.memory_space<vmem>>, %arg2: memref<16x128xbf16, #tpu.memory_space<vmem>>, %arg3: memref<1x128xf32, #tpu.memory_space<vmem>>, %arg4: memref<128x128xbf16, #tpu.memory_space<vmem>>, %arg5: memref<1x128xf32, #tpu.memory_space<vmem>>, %arg6: memref<128x128xbf16, #tpu.memory_space<vmem>>, %arg7: memref<1x128xf32, #tpu.memory_space<vmem>>, %arg8: memref<128x128xbf16, #tpu.memory_space<vmem>>, %arg9: memref<1x1xf32, #tpu.memory_space<smem>>, %arg10: memref<16x128xbf16, #tpu.memory_space<vmem>>) attributes {dimension_semantics = [#tpu.dimension_semantics<parallel>], iteration_bounds = array<i64: 4>, scalar_prefetch = 0 : i64, scratch_operands = 0 : i64, tpu.core_type = #tpu.core_type<tc>, window_params = [{transform_indices = @transform_0, window_bounds = array<i64: 16, 16>}, {pipeline_mode = #tpu.pipeline_mode<synchronous>, transform_indices = @transform_1, window_bounds = array<i64: 16, 128>}, {pipeline_mode = #tpu.pipeline_mode<synchronous>, transform_indices = @transform_2, window_bounds = array<i64: 1, 128>}, {pipeline_mode = #tpu.pipeline_mode<synchronous>, transform_indices = @transform_3, window_bounds = array<i64: 128, 128>}, {pipeline_mode = #tpu.pipeline_mode<synchronous>, transform_indices = @transform_4, window_bounds = array<i64: 1, 128>}, {pipeline_mode = #tpu.pipeline_mode<synchronous>, transform_indices = @transform_5, window_bounds = array<i64: 128, 128>}, {pipeline_mode = #tpu.pipeline_mode<synchronous>, transform_indices = @transform_6, window_bounds = array<i64: 1, 128>}, {pipeline_mode = #tpu.pipeline_mode<synchronous>, transform_indices = @transform_7, window_bounds = array<i64: 128, 128>}, {transform_indices = @transform_8, window_bounds = array<i64: 1, 1>}, {transform_indices = @transform_9, window_bounds = array<i64: 16, 128>}]} {
    %c0 = arith.constant 0 : index
    %c0_0 = arith.constant 0 : index
    %0 = vector.load %arg1[%c0, %c0_0] : memref<16x16xf32, #tpu.memory_space<vmem>>, vector<16x16xf32>
    %1 = arith.truncf %0 : vector<16x16xf32> to vector<16x16xbf16>
    %c0_1 = arith.constant 0 : index
    %c0_2 = arith.constant 0 : index
    %2 = vector.load %arg2[%c0_1, %c0_2] : memref<16x128xbf16, #tpu.memory_space<vmem>>, vector<16x128xbf16>
    %cst = arith.constant dense<0.000000e+00> : vector<16x128xf32>
    %3 = tpu.matmul %1, %2, %cst {dimension_numbers = #tpu.dot_dimension_numbers<[1], [0], [0], [1], [0, 0, 1, 1], [], []>} : vector<16x16xbf16>, vector<16x128xbf16>, vector<16x128xf32> -> vector<16x128xf32>
    %c0_3 = arith.constant 0 : index
    %c0_4 = arith.constant 0 : index
    %4 = vector.load %arg3[%c0_3, %c0_4] : memref<1x128xf32, #tpu.memory_space<vmem>>, vector<1x128xf32>
    %5 = vector.broadcast %4 : vector<1x128xf32> to vector<16x128xf32>
    %6 = arith.addf %3, %5 : vector<16x128xf32>
    %cst_5 = arith.constant 1.000000e-01 : f32
    %7 = vector.broadcast %cst_5 : f32 to vector<16x128xf32>
    %8 = arith.mulf %7, %6 : vector<16x128xf32>
    %9 = arith.maximumf %6, %8 : vector<16x128xf32>
    %10 = arith.truncf %9 : vector<16x128xf32> to vector<16x128xbf16>
    %c0_6 = arith.constant 0 : index
    %c0_7 = arith.constant 0 : index
    %11 = vector.load %arg4[%c0_6, %c0_7] : memref<128x128xbf16, #tpu.memory_space<vmem>>, vector<128x128xbf16>
    %cst_8 = arith.constant dense<0.000000e+00> : vector<16x128xf32>
    %12 = tpu.matmul %10, %11, %cst_8 {dimension_numbers = #tpu.dot_dimension_numbers<[1], [0], [0], [1], [0, 0, 1, 1], [], []>} : vector<16x128xbf16>, vector<128x128xbf16>, vector<16x128xf32> -> vector<16x128xf32>
    %c0_9 = arith.constant 0 : index
    %c0_10 = arith.constant 0 : index
    %13 = vector.load %arg5[%c0_9, %c0_10] : memref<1x128xf32, #tpu.memory_space<vmem>>, vector<1x128xf32>
    %14 = vector.broadcast %13 : vector<1x128xf32> to vector<16x128xf32>
    %15 = arith.addf %12, %14 : vector<16x128xf32>
    %cst_11 = arith.constant 1.000000e-01 : f32
    %16 = vector.broadcast %cst_11 : f32 to vector<16x128xf32>
    %17 = arith.mulf %16, %15 : vector<16x128xf32>
    %18 = arith.maximumf %15, %17 : vector<16x128xf32>
    %19 = arith.truncf %18 : vector<16x128xf32> to vector<16x128xbf16>
    %c0_12 = arith.constant 0 : index
    %c0_13 = arith.constant 0 : index
    %20 = vector.load %arg6[%c0_12, %c0_13] : memref<128x128xbf16, #tpu.memory_space<vmem>>, vector<128x128xbf16>
    %cst_14 = arith.constant dense<0.000000e+00> : vector<16x128xf32>
    %21 = tpu.matmul %19, %20, %cst_14 {dimension_numbers = #tpu.dot_dimension_numbers<[1], [0], [0], [1], [0, 0, 1, 1], [], []>} : vector<16x128xbf16>, vector<128x128xbf16>, vector<16x128xf32> -> vector<16x128xf32>
    %c0_15 = arith.constant 0 : index
    %c0_16 = arith.constant 0 : index
    %22 = vector.load %arg7[%c0_15, %c0_16] : memref<1x128xf32, #tpu.memory_space<vmem>>, vector<1x128xf32>
    %23 = vector.broadcast %22 : vector<1x128xf32> to vector<16x128xf32>
    %24 = arith.addf %21, %23 : vector<16x128xf32>
    %cst_17 = arith.constant dense<0xFF800000> : vector<16xf32>
    %25 = vector.multi_reduction <maximumf>, %24, %cst_17 [1] : vector<16x128xf32> to vector<16xf32>
    %26 = vector.shape_cast %25 : vector<16xf32> to vector<16x1xf32>
    %c0_18 = arith.constant 0 : index
    %c0_19 = arith.constant 0 : index
    %27 = vector.load %arg8[%c0_18, %c0_19] : memref<128x128xbf16, #tpu.memory_space<vmem>>, vector<128x128xbf16>
    %cst_20 = arith.constant dense<0.000000e+00> : vector<16x128xf32>
    %28 = tpu.matmul %19, %27, %cst_20 {dimension_numbers = #tpu.dot_dimension_numbers<[1], [0], [0], [1], [0, 0, 1, 1], [], []>} : vector<16x128xbf16>, vector<128x128xbf16>, vector<16x128xf32> -> vector<16x128xf32>
    %cst_21 = arith.constant dense<0.000000e+00> : vector<16xf32>
    %29 = vector.multi_reduction <add>, %28, %cst_21 [1] : vector<16x128xf32> to vector<16xf32>
    %30 = vector.shape_cast %29 : vector<16xf32> to vector<16x1xf32>
    %c0_22 = arith.constant 0 : index
    %c0_23 = arith.constant 0 : index
    %31 = memref.load %arg9[%c0_22, %c0_23] : memref<1x1xf32, #tpu.memory_space<smem>>
    %32 = vector.broadcast %31 : f32 to vector<16x1xf32>
    %33 = arith.addf %30, %32 : vector<16x1xf32>
    %34 = vector.broadcast %26 : vector<16x1xf32> to vector<16x128xf32>
    %35 = arith.subf %24, %34 : vector<16x128xf32>
    %36 = vector.broadcast %33 : vector<16x1xf32> to vector<16x128xf32>
    %37 = arith.addf %35, %36 : vector<16x128xf32>
    %38 = arith.truncf %37 : vector<16x128xf32> to vector<16x128xbf16>
    %c0_24 = arith.constant 0 : index
    %c0_25 = arith.constant 0 : index
    %39 = vector.load %arg10[%c0_24, %c0_25] : memref<16x128xbf16, #tpu.memory_space<vmem>>, vector<16x128xbf16>
    tpu.vector_store %arg10[%c0_24, %c0_25], %38 {strides = array<i32>} : memref<16x128xbf16, #tpu.memory_space<vmem>>, vector<16x128xbf16>,
    return
  }
  func.func @transform_0(%arg0: i32) -> (i32, i32) {
    %c0_i32 = arith.constant 0 : i32
    %c0_i32_0 = arith.constant 0 : i32
    return %arg0, %c0_i32 : i32, i32
  }
  func.func @transform_1(%arg0: i32) -> (i32, i32) {
    %c0_i32 = arith.constant 0 : i32
    %c0_i32_0 = arith.constant 0 : i32
    %c0_i32_1 = arith.constant 0 : i32
    return %c0_i32, %c0_i32_0 : i32, i32
  }
  func.func @transform_2(%arg0: i32) -> (i32, i32) {
    %c0_i32 = arith.constant 0 : i32
    %c0_i32_0 = arith.constant 0 : i32
    %c0_i32_1 = arith.constant 0 : i32
    return %c0_i32, %c0_i32_0 : i32, i32
  }
  func.func @transform_3(%arg0: i32) -> (i32, i32) {
    %c0_i32 = arith.constant 0 : i32
    %c0_i32_0 = arith.constant 0 : i32
    %c0_i32_1 = arith.constant 0 : i32
    return %c0_i32, %c0_i32_0 : i32, i32
  }
  func.func @transform_4(%arg0: i32) -> (i32, i32) {
    %c0_i32 = arith.constant 0 : i32
    %c0_i32_0 = arith.constant 0 : i32
    %c0_i32_1 = arith.constant 0 : i32
    return %c0_i32, %c0_i32_0 : i32, i32
  }
  func.func @transform_5(%arg0: i32) -> (i32, i32) {
    %c0_i32 = arith.constant 0 : i32
    %c0_i32_0 = arith.constant 0 : i32
    %c0_i32_1 = arith.constant 0 : i32
    return %c0_i32, %c0_i32_0 : i32, i32
  }
  func.func @transform_6(%arg0: i32) -> (i32, i32) {
    %c0_i32 = arith.constant 0 : i32
    %c0_i32_0 = arith.constant 0 : i32
    %c0_i32_1 = arith.constant 0 : i32
    return %c0_i32, %c0_i32_0 : i32, i32
  }
  func.func @transform_7(%arg0: i32) -> (i32, i32) {
    %c0_i32 = arith.constant 0 : i32
    %c0_i32_0 = arith.constant 0 : i32
    %c0_i32_1 = arith.constant 0 : i32
    return %c0_i32, %c0_i32_0 : i32, i32
  }
  func.func @transform_8(%arg0: i32) -> (i32, i32) {
    %c0_i32 = arith.constant 0 : i32
    %c0_i32_0 = arith.constant 0 : i32
    %c0_i32_1 = arith.constant 0 : i32
    return %c0_i32, %c0_i32_0 : i32, i32
  }
  func.func @transform_9(%arg0: i32) -> (i32, i32) {
    %c0_i32 = arith.constant 0 : i32
    %c0_i32_0 = arith.constant 0 : i32
    return %arg0, %c0_i32 : i32, i32
  }
}

</mosaic_0001>

<bundles_post_ra>
// kernel: tpu_custom_call.1
= control target key start
LH: loop header
LB: loop body
LE: loop exit
PB: predicated region body
PF: predicated region fallthrough
CT: control target
= control target key end

     0   :  { %s1528_s0 = inlined_call_operand.vmem [shape: f32[64,16], index: 0, kind: input, shape index: {}]   ;;  %s1529_s1 = inlined_call_operand.vmem [shape: bf16[16,128], index: 1, kind: input, shape index: {}]   ;;  %s1530_s2 = inlined_call_operand.vmem [shape: f32[1,128], index: 2, kind: input, shape index: {}]   ;;  %s1531_s3 = inlined_call_operand.vmem [shape: bf16[128,128], index: 3, kind: input, shape index: {}]   ;;  %s1532_s4 = inlined_call_operand.vmem [shape: f32[1,128], index: 4, kind: input, shape index: {}]   ;;  %s1533_s5 = inlined_call_operand.hbm [shape: bf16[128,128], index: 5, kind: input, shape index: {}]   ;;  %s1534_s6 = inlined_call_operand.vmem [shape: f32[1,128], index: 6, kind: input, shape index: {}]   ;;  %s1535_s7 = inlined_call_operand.hbm [shape: bf16[128,128], index: 7, kind: input, shape index: {}]   ;;  %s1536_s8 = inlined_call_operand.<no memory space> [shape: f32[1,1], index: 8, kind: input, shape index: {}]   ;;  %s1537_s9 = inlined_call_operand.hbm [shape: bf16[64,128], index: 9, kind: output, shape index: {}]  }
   0x1   :  { %14 = sst [smem:[#allocation2]] %s1536_s8 }
   0x2   :  { %15 = vsyncpa [#allocation4], 0 }
   0x3   :  { %16 = vsyncpa [#allocation7], 0 }
   0x4   :  { %17 = vsyncpa [#allocation5], 0 }
   0x5   :  { %19 = vsyncpa [#allocation5 + $0x1], 0  ;;  %s1317_s11 = smov 0   ;;  %s1319_s12 = smov 0  }
   0x6   :  { %s1321_s13 = smov 0   ;;  %s1323_s14 = smov 0  }
   0x7 LB: > { %s1338_s8 = sadd.s32 4294967295, %s1253_s14   ;;  %s892_s15 = sadd.s32 4294967294, %s1253_s14   ;;  %s1253_s14 = sphi %s1323_s14, %s1551_s14   ;;  %s1249_s13 = sphi %s1321_s13, %s1550_s13   ;;  %s1245_s12 = sphi %s1319_s12, %s1549_s12   ;;  %s1241_s11 = sphi %s1317_s11, %s1548_s11  }
   0x8   : > { %s1342_s16 = sadd.s32 1, %s1253_s14   ;;  %s226_s17 = sadd.s32 1, %s1249_s13 }
   0x9   : > { %s223_s18 = ssub.s32 %s1253_s14, %s1342_s16  ;;  %p236_p0 = scmp.ne.s32.totalorder %s1249_s13, %s1245_s12 }
   0xa   : > { %p224_p1 = scmp.eq.s32.totalorder %s223_s18, 0  ;;  %p237_p2 = scmp.eq.s32.totalorder %s1338_s8, 3 }
   0xb   : > { %p242_p3 = scmp.ne.s32.totalorder %s1245_s12, %s1241_s11  ;;  %p243_p4 = scmp.eq.s32.totalorder %s892_s15, 3 }
   0xc   : > { %s1353_s19 = scalar_select %p224_p1, %s1249_s13, %s226_s17  }
   0xd   : > { %p1355_p5 = por %p237_p2, %p236_p0  ;;  %p1359_p6 = por %p243_p4, %p242_p3 }
   0xe   : > { %p893_p7 = scmp.ge.s32.totalorder %s1253_s14, 1  ;;  %p250_p8 = scmp.lt.s32.totalorder %s1253_s14, 5 }
   0xf   : > { %s1540_s21 = scalar_select %p1359_p6, 1, 0 }
  0x10   : > { %p1538_p9 = scmp.eq.s32.totalorder %s1338_s8, 0  ;;  %p1366_p10 = pnand %p893_p7, %p250_p8 }
  0x11   : > { %s1255_s23 = smov [#allocation3]   ;;  %s1256_s26 = smov [#allocation6]  }
  0x12   : > { %s274_s24 = sshll.u32 %s1255_s23, 4  ;;  %p1052_p11 = pneg %p1366_p10  ;;  %s275_s24 = int_to_ptr.vmem [resolvable:$true] %s274_s24 }
  0x13   : > { %s290_s27 = sshll.u32 %s1256_s26, 4  ;;  %s1144_s28 = scalar_lea.vmem %s275_s24, 1024  ;;  %s291_s27 = int_to_ptr.vmem [resolvable:$true] %s290_s27 }
  0x14   : > { %p1374_p12 = pnand %p1538_p9, %p1052_p11  ;;  %p1145_p0 = scmp.ne.s32.totalorder %s275_s24, %s1144_s28 }
  0x15   : > { %p1152_p3 = scmp.lt.s32.totalorder %s275_s24, %s275_s24  ;;  %p1153_p4 = scmp.lt.s32.totalorder %s1144_s28, %s1144_s28 }
  0x16   : > { %p1135_p13 = pneg %p1374_p12 }
  0x17   : > { %p1154_p7 = por %p1153_p4, %p1152_p3 }
  0x18   : > { %p1147_p1 = pnand %p1145_p0, %p1135_p13 }
  0x1a   : > { %p1148_p2 = pneg %p1147_p1 }
  0x1c   : > { %p1155_p8 = pnand %p1154_p7, %p1148_p2 }
  0x1e   : > { %1158 = shalt.err (!%p1155_p8)
}
  0x1f   : > { %s1257_s29 = smov 64   ;;  %s1258_s30 = smov 4  }
  0x20   : > { %1055 = dma.hbm_to_vmem [thread:$0]  (!%p1374_p12), %s1533_s5, 1024, %s275_s24, [#allocation4], %s1257_s29, %s1257_s29, %s1258_s30  }
  0x21   : > { %s1170_s17 = scalar_lea.vmem %s291_s27, 1024  ;;  %p1178_p9 = scmp.lt.s32.totalorder %s291_s27, %s291_s27 }
  0x22   : > { %p1171_p11 = scmp.ne.s32.totalorder %s291_s27, %s1170_s17  ;;  %p1179_p6 = scmp.lt.s32.totalorder %s1170_s17, %s1170_s17 }
  0x24   : > { %p1173_p0 = pnand %p1171_p11, %p1135_p13  ;;  %p1180_p3 = por %p1179_p6, %p1178_p9 }
  0x26   : > { %p1174_p1 = pneg %p1173_p0 }
  0x28   : > { %p1181_p2 = pnand %p1180_p3, %p1174_p1 }
  0x2a   : > { %1184 = shalt.err (!%p1181_p2)
}
  0x2b   : > { %1058 = dma.hbm_to_vmem [thread:$0]  (!%p1374_p12), %s1535_s7, 1024, %s291_s27, [#allocation7], %s1257_s29, %s1257_s29, %s1258_s30  }
  0x2c   : > { %318 = sbr.rel (%p1366_p10) target bundleno = 829 (0x33d), region = 56  ;;  %p1543_p4 = scmp.eq.s32.totalorder (!%p1366_p10), %s1338_s8, 0 }
  0x31   : > { %1228 = dma.done.wait (%p1543_p4), [#allocation4], 1024   ;;  %p1544_p13 = pmov %p1543_p4 }
  0x32   : > { %p1545_p7 = pmov %p1543_p4 }
  0x33   : > { %1230 = vsyncadd (%p1544_p13), [#allocation4], 4294966272 }
  0x34   : > { %1232 = dma.done.wait (%p1545_p7), [#allocation7], 1024   ;;  %p1546_p6 = pmov %p1543_p4 }
  0x35   : > { %s901_s24 = sshll.u32 %s1338_s8, 1  ;;  %v1259_v0 = vmov 0.0   ;;  %vm1260_vm0 = vmmov 0   ;;  %v1108_v1 = vld [vmem:[%s1529_s1] sm:$0xff]   ;;  %vm384_vm1 = vcmask 130048   ;;  %v1109_v5 = vld [vmem:[%s1531_s3 + $0x38] sm:$0xff]  }
  0x36   : > { %1234 = vsyncadd (%p1546_p6), [#allocation7], 4294966272  ;;  %976 = vmatprep.subr.bf16.mxu0 %v1259_v0  ;;  %978 = vmatprep.mubr.msk.bf16.mxu0 %vm1260_vm0, %v1259_v0  ;;  %p359_p9 = scmp.lt.s32.totalorder %s901_s24, 7  ;;  %v1110_v6 = vld [vmem:[%s1531_s3 + $0x30] sm:$0xff]   ;;  %v1111_v7 = vld [vmem:[%s1531_s3 + $0x28] sm:$0xff]   ;;  %s776_s26 = sld [smem:[#allocation2]] }
  0x37   : > { %982 = vmatprep.subr.bf16.mxu1 %v1259_v0  ;;  %998 = vmatprep.mubr.msk.bf16.mxu1 %vm1260_vm0, %v1259_v0  ;;  %v1112_v8 = vld [vmem:[%s1531_s3 + $0x20] sm:$0xff]   ;;  %v1113_v9 = vld [vmem:[%s1531_s3 + $0x18] sm:$0xff]   ;;  %v1114_v10 = vld [vmem:[%s1531_s3 + $0x10] sm:$0xff]   ;;  %s941_s29 = sshll.u32 %s1338_s8, 7  ;;  %s1261_s8 = smov [#allocation8]  }
  0x38   : > { %s1553_s24 = smov (!%p359_p9, %s901_s24), 7  ;;  %977 = vmatpush3.bf16.msra.mxu0 %v1108_v1  ;;  %983 = vmatpush3.bf16.msra.mxu1 %v1109_v5  ;;  %v1115_v11 = vld [vmem:[%s1531_s3 + $0x8] sm:$0xff]   ;;  %v1116_v12 = vld [vmem:[%s1531_s3] sm:$0xff]   ;;  %v1117_v13 = vld [vmem:[#allocation3 + $0x38] sm:$0xff]   ;;  %s1484_s18 = scalar_lea.hbm %s1537_s9, %s941_s29 }
  0x39   : > { %s902_s22 = sshll.u32 %s1553_s24, 3  ;;  %1002 = vmatprep.subr.bf16.mxu0 %v1259_v0  ;;  %984 = vmatprep.subr.bf16.mxu1 %v1259_v0  ;;  %v1119_v14 = vld [vmem:[#allocation3 + $0x30] sm:$0xff]   ;;  %v1121_v15 = vld [vmem:[#allocation3 + $0x28] sm:$0xff]   ;;  %v1123_v16 = vld [vmem:[#allocation3 + $0x20] sm:$0xff]  }
  0x3a   : > { %s362_s27 = scalar_lea.vmem %s1528_s0, %s902_s22  ;;  %v1125_v17 = vld [vmem:[#allocation3 + $0x18] sm:$0xff]   ;;  %v903_v18 = vld [vmem:[%s1530_s2] ss:$0 sm:$0xff]  ;;  %v1120_v31 = vld [vmem:[#allocation6 + $0x30] sm:$0xff]   ;;  %s1189_s22 = sshll.u32 %s1261_s8, 4  ;;  %s1190_s22 = int_to_ptr.vmem [resolvable:$false] %s1189_s22 }
  0x3b   : > { %v366_v2 = vld [vmem:[%s362_s27] sm:$0xff]  ;;  %v367_v3 = vld [vmem:[%s362_s27 + $0x8] sm:$0xff]  ;;  %v1118_v29 = vld [vmem:[#allocation6 + $0x38] sm:$0xff]   ;;  %s355_s27 = sand.u32 1, %s1245_s12   ;;  %s1191_s25 = scalar_lea.vmem %s1190_s22, 256 }
  0x3c   : > { %v368_v4 = vpack.c.bf16 %v367_v3, %v366_v2  ;;  %985 = vmatpush3.bf16.msra.mxu1 %v1110_v6  ;;  %v1122_v32 = vld [vmem:[#allocation6 + $0x28] sm:$0xff]   ;;  %v1124_v33 = vld [vmem:[#allocation6 + $0x20] sm:$0xff]   ;;  %v1126_v34 = vld [vmem:[#allocation6 + $0x18] sm:$0xff]   ;;  %s900_s28 = sshll.u32 %s355_s27, 3  ;;  %v777_v2 = vstv %s776_s26  ;;  %s1488_s23 = scalar_lea.sflag [#allocation5], %s355_s27 }
  0x3d   : > { %986 = vmatprep.subr.bf16.mxu1 %v1259_v0  ;;  %v1127_v35 = vld [vmem:[#allocation3 + $0x10] sm:$0xff]   ;;  %v1129_v37 = vld [vmem:[#allocation3 + $0x8] sm:$0xff]   ;;  %v1131_v39 = vld [vmem:[#allocation3] sm:$0xff]   ;;  %s357_s30 = scalar_lea.vmem [#allocation8], %s900_s28 }
  0x3e   : > { %979 = vmatmul.mubr.msk.bf16.vlgmr.msra.gmra.mxu0 %vm384_vm1, %v368_v4  ;;  %v1128_v36 = vld [vmem:[#allocation6 + $0x10] sm:$0xff]   ;;  %v1130_v38 = vld [vmem:[#allocation6 + $0x8] sm:$0xff]   ;;  %v1132_v40 = vld [vmem:[#allocation6] sm:$0xff]   ;;  %s808_s10 = sshll.u32 %s357_s30, 4  ;;  %s1486_s10 = int_to_ptr.vmem [resolvable:$true] %s808_s10 }
  0x3f   : > { %1018 = vmatprep.mubr.msk.bf16.mxu0 %vm1260_vm0, %v1259_v0  ;;  %1003 = vmatpush3.bf16.msra.mxu0 %v1117_v13  ;;  %v906_v41 = vld [vmem:[%s1532_s4] ss:$0 sm:$0xff]  ;;  %s1185_s24 = scalar_lea.vmem %s1486_s10, 128  ;;  %p1192_p11 = scmp.lt.s32.totalorder %s1486_s10, %s1190_s22 }
  0x40   : > { %987 = vmatpush3.bf16.msra.mxu1 %v1111_v7  ;;  %1004 = vmatprep.subr.bf16.mxu0 %v1259_v0  ;;  %v915_v53 = vld [vmem:[%s1534_s6] ss:$0 sm:$0xff]  ;;  %p1186_p10 = scmp.ne.s32.totalorder %s1486_s10, %s1185_s24  ;;  %p1193_p0 = scmp.lt.s32.totalorder %s1191_s25, %s1185_s24 }
  0x41   : > { %988 = vmatprep.subr.bf16.mxu1 %v1259_v0 }
  0x42   : > { %p1187_p12 = pnand %p1186_p10, %p1355_p5  ;;  %p1194_p1 = por %p1193_p0, %p1192_p11 }
  0x43   : > { %1005 = vmatpush3.bf16.msra.mxu0 %v1119_v14 }
  0x44   : > { %989 = vmatpush3.bf16.msra.mxu1 %v1112_v8  ;;  %1006 = vmatprep.subr.bf16.mxu0 %v1259_v0  ;;  %p1188_p8 = pneg %p1187_p12 }
  0x45   : > { %990 = vmatprep.subr.bf16.mxu1 %v1259_v0 }
  0x46   : > { %p1195_p3 = pnand %p1194_p1, %p1188_p8 }
  0x47   : > { %1007 = vmatpush3.bf16.msra.mxu0 %v1121_v15 }
  0x48   : > { %991 = vmatpush3.bf16.msra.mxu1 %v1113_v9  ;;  %1008 = vmatprep.subr.bf16.mxu0 %v1259_v0 }
  0x49   : > { %992 = vmatprep.subr.bf16.mxu1 %v1259_v0 }
  0x4b   : > { %1009 = vmatpush3.bf16.msra.mxu0 %v1123_v16 }
  0x4c   : > { %993 = vmatpush3.bf16.msra.mxu1 %v1114_v10  ;;  %1010 = vmatprep.subr.bf16.mxu0 %v1259_v0 }
  0x4d   : > { %994 = vmatprep.subr.bf16.mxu1 %v1259_v0 }
  0x4f   : > { %1011 = vmatpush3.bf16.msra.mxu0 %v1125_v17 }
  0x50   : > { %995 = vmatpush3.bf16.msra.mxu1 %v1115_v11  ;;  %1012 = vmatprep.subr.bf16.mxu0 %v1259_v0 }
  0x51   : > { %996 = vmatprep.subr.bf16.mxu1 %v1259_v0 }
  0x53   : > { %1013 = vmatpush3.bf16.msra.mxu0 %v1127_v35 }
  0x54   : > { %997 = vmatpush3.bf16.msra.mxu1 %v1116_v12  ;;  %1014 = vmatprep.subr.bf16.mxu0 %v1259_v0 }
  0x55   : > { %1022 = vmatprep.subr.bf16.mxu1 %v1259_v0 }
  0x57   : > { %1015 = vmatpush3.bf16.msra.mxu0 %v1129_v37 }
  0x58   : > { %1016 = vmatprep.subr.bf16.mxu0 %v1259_v0 }
  0x5b   : > { %1017 = vmatpush3.bf16.msra.mxu0 %v1131_v39 }
  0xfe   : > { %v422_v19 = vpop.f32.mrf.mxu0 }
  0xff   : > { %v423_v20 = vadd.f32 %v903_v18, %v422_v19 }
 0x100   : > { %v980_v21 = vpop.f32.mrf.mxu0 }
 0x101   : > { %v429_v23 = vmul.f32 0.1, %v423_v20 }
 0x102   : > { %v425_v22 = vpop.f32.mrf.mxu0 }
 0x103   : > { %v426_v24 = vadd.f32 %v903_v18, %v425_v22  ;;  %v431_v27 = vmax.f32 %v423_v20, %v429_v23 }
 0x104   : > { %v981_v25 = vpop.f32.mrf.mxu0 }
 0x105   : > { %v430_v26 = vmul.f32 0.1, %v426_v24 }
 0x107   : > { %v432_v28 = vmax.f32 %v426_v24, %v430_v26 }
 0x109   : > { %v433_v30 = vpack.c.bf16 %v432_v28, %v431_v27 }
 0x10b   : > { %999 = vmatmul.mubr.bf16.vlgmr.msra.gmra.mxu1 %v433_v30 }
 0x10c   : > { %1023 = vmatpush3.bf16.msra.mxu1 %v1118_v29  ;;  %1038 = vmatprep.mubr.msk.bf16.mxu1 %vm1260_vm0, %v1259_v0 }
 0x10d   : > { %1024 = vmatprep.subr.bf16.mxu1 %v1259_v0 }
 0x110   : > { %1025 = vmatpush3.bf16.msra.mxu1 %v1120_v31 }
 0x111   : > { %1026 = vmatprep.subr.bf16.mxu1 %v1259_v0 }
 0x114   : > { %1027 = vmatpush3.bf16.msra.mxu1 %v1122_v32 }
 0x115   : > { %1028 = vmatprep.subr.bf16.mxu1 %v1259_v0 }
 0x118   : > { %1029 = vmatpush3.bf16.msra.mxu1 %v1124_v33 }
 0x119   : > { %1030 = vmatprep.subr.bf16.mxu1 %v1259_v0 }
 0x11c   : > { %1031 = vmatpush3.bf16.msra.mxu1 %v1126_v34 }
 0x11d   : > { %1032 = vmatprep.subr.bf16.mxu1 %v1259_v0 }
 0x120   : > { %1033 = vmatpush3.bf16.msra.mxu1 %v1128_v36 }
 0x121   : > { %1034 = vmatprep.subr.bf16.mxu1 %v1259_v0 }
 0x124   : > { %1035 = vmatpush3.bf16.msra.mxu1 %v1130_v38 }
 0x125   : > { %1036 = vmatprep.subr.bf16.mxu1 %v1259_v0 }
 0x128   : > { %1037 = vmatpush3.bf16.msra.mxu1 %v1132_v40 }
 0x1cb   : > { %v539_v42 = vpop.f32.mrf.mxu1 }
 0x1cc   : > { %v540_v43 = vadd.f32 %v906_v41, %v539_v42 }
 0x1cd   : > { %v1000_v44 = vpop.f32.mrf.mxu1 }
 0x1ce   : > { %v546_v46 = vmul.f32 0.1, %v540_v43 }
 0x1cf   : > { %v542_v45 = vpop.f32.mrf.mxu1 }
 0x1d0   : > { %v543_v47 = vadd.f32 %v906_v41, %v542_v45  ;;  %v548_v50 = vmax.f32 %v540_v43, %v546_v46 }
 0x1d1   : > { %v1001_v48 = vpop.f32.mrf.mxu1 }
 0x1d2   : > { %v547_v49 = vmul.f32 0.1, %v543_v47 }
 0x1d4   : > { %v549_v51 = vmax.f32 %v543_v47, %v547_v49 }
 0x1d6   : > { %v550_v52 = vpack.c.bf16 %v549_v51, %v548_v50 }
 0x1d8   : > { %1019 = vmatmul.mubr.bf16.vlgmr.msra.gmra.mxu0 %v550_v52  ;;  %1039 = vmatmul.mubr.bf16.vlgmr.msra.gmra.mxu1 %v550_v52 }
 0x298   : > { %v656_v54 = vpop.f32.mrf.mxu0  ;;  %v765_v55 = vpop.f32.mrf.mxu1 }
 0x299   : > { %v657_v56 = vadd.f32 %v915_v53, %v656_v54  ;;  %772 = vadd.xlane.f32.xlu1 %v765_v55 }
 0x29a   : > { %v1020_v57 = vpop.f32.mrf.mxu0  ;;  %v1040_v58 = vpop.f32.mrf.mxu1 }
 0x29b   : > { %663 = vmax.xlane.f32.xlu0 %v657_v56 }
 0x29c   : > { %v659_v59 = vpop.f32.mrf.mxu0  ;;  %v768_v60 = vpop.f32.mrf.mxu1 }
 0x29d   : > { %v660_v61 = vadd.f32 %v915_v53, %v659_v59  ;;  %774 = vadd.xlane.f32.xlu1 %v768_v60 }
 0x29e   : > { %v1021_v62 = vpop.f32.mrf.mxu0  ;;  %v1041_v63 = vpop.f32.mrf.mxu1 }
 0x29f   : > { %665 = vmax.xlane.f32.xlu0 %v660_v61 }
 0x322   : > { %v773_v0 = vpop.xlane.xlu1 %772 }
 0x323   : > { %v778_v6 = vadd.f32 %v777_v2, %v773_v0 }
 0x324   : > { %v664_v1 = vpop.xlane.xlu0 %663 }
 0x325   : > { %v780_v4 = vsub.f32 %v657_v56, %v664_v1 }
 0x326   : > { %v775_v3 = vpop.xlane.xlu1 %774 }
 0x327   : > { %v779_v7 = vadd.f32 %v777_v2, %v775_v3  ;;  %v782_v9 = vadd.f32 %v780_v4, %v778_v6 }
 0x328   : > { %v666_v5 = vpop.xlane.xlu0 %665 }
 0x329   : > { %v781_v8 = vsub.f32 %v660_v61, %v666_v5 }
 0x32b   : > { %v783_v10 = vadd.f32 %v781_v8, %v779_v7 }
 0x32d   : > { %v945_v11 = vpack.c.bf16 %v783_v10, %v782_v9 }
 0x32f   : > { %946 = vst [vmem:[%s357_s30] sm:$0xff] %v945_v11  }
 0x330   : > { %1198 = shalt.err (!%p1195_p3)
}
 0x331   : > { %s1199_s26 = scalar_lea.hbm %s1484_s18, 128  ;;  %s1203_s29 = scalar_lea.hbm %s1537_s9, 512 }
 0x332   : > { %p1200_p2 = scmp.ne.s32.totalorder %s1484_s18, %s1199_s26  ;;  %p1204_p7 = scmp.lt.s32.totalorder %s1484_s18, %s1537_s9 }
 0x333   : > { %p1205_p6 = scmp.lt.s32.totalorder %s1203_s29, %s1199_s26 }
 0x334   : > { %p1201_p4 = pnand %p1200_p2, %p1355_p5 }
 0x335   : > { %p1206_p9 = por %p1205_p6, %p1204_p7 }
 0x336   : > { %p1202_p13 = pneg %p1201_p4 }
 0x338   : > { %p1207_p10 = pnand %p1206_p9, %p1202_p13 }
 0x33a   : > { %1210 = shalt.err (!%p1207_p10)
}
 0x33b   : > { %s1262_s17 = smov 64   ;;  %s1263_s24 = smov 4  }
 0x33c   : > { %1050 = dma.vmem_to_hbm [thread:$0]  (%p1355_p5), %s1486_s10, 128, %s1484_s18, %s1488_s23, %s1262_s17, %s1262_s17, %s1263_s24  }
 0x33d PF: > { %p1067_p12 = scmp.ge.s32.totalorder %s1253_s14, 2  ;;  %s823_s8 = sand.u32 1, %s1241_s11  }
 0x33e   : > { %p1547_p8 = scmp.ne.s32.totalorder %s1540_s21, 0  ;;  %s824_s22 = scalar_lea.sflag [#allocation5], %s823_s8 }
 0x340   : > { %p1060_p11 = pnand %p1067_p12, %p1547_p8 }
 0x342   : > { %p1061_p0 = pneg %p1060_p11 }
 0x344   : > { %1236 = dma.done.wait (%p1061_p0), %s824_s22, 128  }
 0x345   : > { %1238 = vsyncadd (%p1061_p0), %s824_s22, 4294967168  ;;  %p22_p1 = scmp.ge.s32.totalorder %s1342_s16, 6   ;;  %s1548_s11 = smov %s1245_s12 }
 0x346   : > { %s1549_s12 = smov %s1249_s13  ;;  %s1550_s13 = smov %s1353_s19 }
 0x347   : > { %s1551_s14 = smov %s1342_s16  ;;  %24 = sbr.rel (!%p22_p1) target bundleno = 7 (0x7), region = 100 }
 0x34c   :  { %829 = vsyncpa [#allocation4], 1 }
 0x34d   :  { %831 = vsyncpa [#allocation4 + $0x1], 1 }
 0x34e   :  { %832 = vsyncpa [#allocation7], 1 }
 0x34f   :  { %833 = vsyncpa [#allocation5], 1 }
 0x350   :  { %835 = vsyncpa [#allocation5 + $0x1], 1 }

</bundles_post_ra>
